<compile_context>
chip_gen: v7x
topology: tpu7x:2x2x1
jax: 0.10.0
libtpu: 0.0.40
codegen_flags: <defaults>
</compile_context>

<pallas_src>
import math

import jax
import jax.numpy as jnp
from jax.experimental import pallas as pl
from jax.experimental.pallas import tpu as pltpu


def _round_up(x, m):
    return (x + m - 1) // m * m


# ----------------------------- Pallas kernels ------------------------------

def _mm_bias_kernel(a_ref, w_ref, b_ref, o_ref, acc_ref):
    """out = A @ W + bias, accumulated over the K grid axis in f32."""
    @pl.when(pl.program_id(2) == 0)
    def _():
        acc_ref[...] = jnp.zeros_like(acc_ref)

    acc_ref[...] += jnp.dot(a_ref[...], w_ref[...],
                            preferred_element_type=jnp.float32)

    @pl.when(pl.program_id(2) == pl.num_programs(2) - 1)
    def _():
        o_ref[...] = (acc_ref[...] +
                      b_ref[...].astype(jnp.float32)).astype(o_ref.dtype)


def _mm_bias_res_kernel(a_ref, w_ref, b_ref, r_ref, o_ref, acc_ref):
    """out = A @ W + bias + residual (residual add fused into the epilogue)."""
    @pl.when(pl.program_id(2) == 0)
    def _():
        acc_ref[...] = jnp.zeros_like(acc_ref)

    acc_ref[...] += jnp.dot(a_ref[...], w_ref[...],
                            preferred_element_type=jnp.float32)

    @pl.when(pl.program_id(2) == pl.num_programs(2) - 1)
    def _():
        o_ref[...] = (acc_ref[...] +
                      b_ref[...].astype(jnp.float32) +
                      r_ref[...].astype(jnp.float32)).astype(o_ref.dtype)


def _gn_mod_silu_kernel(x_ref, p_ref, g_ref, b_ref, add_ref, scale_ref,
                        shift_ref, o_ref):
    """Fused GroupNorm + (pre-add | scale/shift) + SiLU for one batch element.

    x_ref:       (1, HW, C)  activations
    p_ref:       (C, C)      group-averaging matrix (1/Cg inside a group)
    g_ref/b_ref: (1, C)      GroupNorm affine gamma / beta
    add_ref:     (1, 1, C)   per-(n,c) bias added BEFORE the norm (h + emb_out)
    scale/shift: (1, 1, C)   FiLM modulation applied AFTER the norm
    """
    x = x_ref[0].astype(jnp.float32) + add_ref[0].astype(jnp.float32)
    hw = x.shape[0]
    inv_hw = 1.0 / hw
    ch_mean = jnp.sum(x, axis=0, keepdims=True) * inv_hw          # (1, C)
    ch_msq = jnp.sum(x * x, axis=0, keepdims=True) * inv_hw       # (1, C)
    stats = jnp.concatenate([ch_mean, ch_msq], axis=0)            # (2, C)
    gstats = jnp.dot(stats, p_ref[...], preferred_element_type=jnp.float32)
    g_mean = gstats[0:1, :]
    g_var = gstats[1:2, :] - g_mean * g_mean
    inv = jax.lax.rsqrt(g_var + 1e-5)
    y = (x - g_mean) * inv
    y = y * g_ref[...].astype(jnp.float32) + b_ref[...].astype(jnp.float32)
    y = (y * (1.0 + scale_ref[0].astype(jnp.float32))
         + shift_ref[0].astype(jnp.float32))
    y = y * jax.nn.sigmoid(y)                                     # SiLU
    o_ref[0] = y.astype(o_ref.dtype)


# ------------------------------ wrappers -----------------------------------

def _tiled_matmul_bias(a, w, bias, residual=None, *, out_dtype=jnp.float32,
                       mxu_dtype=jnp.bfloat16, tile_m=256, tile_n=256):
    """(M,K)@(K,N) + bias [+ residual] on the MXU with an (M, N, K) grid."""
    M, K = a.shape
    Kw, N = w.shape
    assert K == Kw

    tm = tile_m if M >= tile_m else _round_up(M, 8)
    mp = _round_up(M, tm)

    kp = _round_up(K, 128)
    if kp <= 1024:           # single K step; avoids padding K up to 512-mult
        tk = kp
    else:
        tk = 512
        kp = _round_up(K, tk)

    np_ = _round_up(N, 128)
    tn = tile_n if np_ % tile_n == 0 else 128

    a_p = jnp.pad(a.astype(mxu_dtype), ((0, mp - M), (0, kp - K)))
    w_p = jnp.pad(w.astype(mxu_dtype), ((0, kp - K), (0, np_ - N)))
    b_p = jnp.pad(bias.reshape(1, N).astype(jnp.float32),
                  ((0, 0), (0, np_ - N)))

    grid = (mp // tm, np_ // tn, kp // tk)
    in_specs = [
        pl.BlockSpec((tm, tk), lambda i, j, k: (i, k)),
        pl.BlockSpec((tk, tn), lambda i, j, k: (k, j)),
        pl.BlockSpec((1, tn), lambda i, j, k: (0, j)),
    ]
    out_spec = pl.BlockSpec((tm, tn), lambda i, j, k: (i, j))
    scratch = [pltpu.VMEM((tm, tn), jnp.float32)]
    cparams = pltpu.CompilerParams(
        dimension_semantics=("parallel", "parallel", "arbitrary"))

    if residual is None:
        out = pl.pallas_call(
            _mm_bias_kernel,
            out_shape=jax.ShapeDtypeStruct((mp, np_), out_dtype),
            grid=grid, in_specs=in_specs, out_specs=out_spec,
            scratch_shapes=scratch, compiler_params=cparams,
        )(a_p, w_p, b_p)
    else:
        r_p = jnp.pad(residual.astype(jnp.float32),
                      ((0, mp - M), (0, np_ - N)))
        out = pl.pallas_call(
            _mm_bias_res_kernel,
            out_shape=jax.ShapeDtypeStruct((mp, np_), out_dtype),
            grid=grid,
            in_specs=in_specs + [pl.BlockSpec((tm, tn), lambda i, j, k: (i, j))],
            out_specs=out_spec, scratch_shapes=scratch,
            compiler_params=cparams,
        )(a_p, w_p, b_p, r_p)
    return out[:M, :N]


def conv3x3_nhwc(x_nhwc, weight_oihw, bias, residual_nhwc=None,
                 mxu_dtype=jnp.bfloat16):
    """Conv2d(kernel=3, stride=1, padding=1) as a tiled MXU matmul."""
    N, H, W, Cin = x_nhwc.shape
    Cout = weight_oihw.shape[0]
    # im2col emitted in bf16 (halves the 9x-amplified patch stream in HBM).
    # TODO(synk): a per-tap in-kernel reduction with manual halo DMA would
    # remove the 9x im2col materialization entirely.
    xp = jnp.pad(x_nhwc, ((0, 0), (1, 1), (1, 1), (0, 0))).astype(mxu_dtype)
    taps = [xp[:, kh:kh + H, kw:kw + W, :]
            for kh in range(3) for kw in range(3)]
    patches = jnp.stack(taps, axis=3).reshape(N * H * W, 9 * Cin)
    wm = jnp.transpose(weight_oihw, (2, 3, 1, 0)).reshape(9 * Cin, Cout)
    res = (None if residual_nhwc is None
           else residual_nhwc.reshape(N * H * W, Cout))
    out = _tiled_matmul_bias(patches, wm, bias, residual=res,
                             mxu_dtype=mxu_dtype)
    return out.reshape(N, H, W, Cout)


def conv1x1_nhwc(x_nhwc, weight_oihw, bias, residual_nhwc=None,
                 mxu_dtype=jnp.bfloat16):
    """Conv2d(kernel=1) as a tiled MXU matmul."""
    N, H, W, Cin = x_nhwc.shape
    Cout = weight_oihw.shape[0]
    a = x_nhwc.reshape(N * H * W, Cin)
    wm = weight_oihw.reshape(Cout, Cin).T
    res = (None if residual_nhwc is None
           else residual_nhwc.reshape(N * H * W, Cout))
    out = _tiled_matmul_bias(a, wm, bias, residual=res, mxu_dtype=mxu_dtype)
    return out.reshape(N, H, W, Cout)


def group_norm_silu(x_nhwc, gamma, beta, *, groups=32, add=None, scale=None,
                    shift=None):
    """GroupNorm(groups) [+ pre-add or post scale/shift] + SiLU, per sample."""
    N, H, W, C = x_nhwc.shape
    assert C % groups == 0
    cg = C // groups
    x3 = x_nhwc.reshape(N, H * W, C).astype(jnp.float32)
    gidx = jnp.arange(C) // cg
    p = (gidx[:, None] == gidx[None, :]).astype(jnp.float32) / cg     # (C, C)

    def as_n1c(v):
        if v is None:
            return jnp.zeros((N, 1, C), jnp.float32)
        return v.reshape(N, 1, C).astype(jnp.float32)

    add_, scale_, shift_ = as_n1c(add), as_n1c(scale), as_n1c(shift)
    gamma_ = gamma.reshape(1, C).astype(jnp.float32)
    beta_ = beta.reshape(1, C).astype(jnp.float32)

    out = pl.pallas_call(
        _gn_mod_silu_kernel,
        out_shape=jax.ShapeDtypeStruct((N, H * W, C), jnp.float32),
        grid=(N,),
        in_specs=[
            pl.BlockSpec((1, H * W, C), lambda n: (n, 0, 0)),
            pl.BlockSpec((C, C), lambda n: (0, 0)),
            pl.BlockSpec((1, C), lambda n: (0, 0)),
            pl.BlockSpec((1, C), lambda n: (0, 0)),
            pl.BlockSpec((1, 1, C), lambda n: (n, 0, 0)),
            pl.BlockSpec((1, 1, C), lambda n: (n, 0, 0)),
            pl.BlockSpec((1, 1, C), lambda n: (n, 0, 0)),
        ],
        out_specs=pl.BlockSpec((1, H * W, C), lambda n: (n, 0, 0)),
        compiler_params=pltpu.CompilerParams(
            dimension_semantics=("parallel",)),
    )(x3, p, gamma_, beta_, add_, scale_, shift_)
    # TODO(synk): for very large H*W the per-sample block should be tiled
    # spatially (two-pass statistics); fine for typical diffusion resolutions.
    return out.reshape(N, H, W, C)


# ------------------------------- ResBlock ----------------------------------

class ResBlock:
    """JAX/Pallas port of the PyTorch ResBlock forward pass (dims=2, eval)."""

    def __init__(self, channels, emb_channels, dropout, out_channels=None,
                 use_conv=False, use_scale_shift_norm=False, dims=2,
                 use_checkpoint=False, *, key, dtype=jnp.float32):
        assert dims == 2, "only dims=2 is implemented"
        # TODO(synk): dims=1 and dims=3 conv variants not implemented.
        self.channels = channels
        self.emb_channels = emb_channels
        # TODO(synk): Dropout is treated as identity (inference-mode forward).
        self.dropout = dropout
        self.out_channels = out_channels or channels
        self.use_conv = use_conv
        self.use_scale_shift_norm = use_scale_shift_norm
        self.use_checkpoint = use_checkpoint   # no effect on forward pass

        C, Co, E = channels, self.out_channels, emb_channels
        ks = jax.random.split(key, 8)

        def conv_init(k, cout, cin, ksz):
            kw, kb = jax.random.split(k)
            bound = 1.0 / math.sqrt(cin * ksz * ksz)
            return (jax.random.uniform(kw, (cout, cin, ksz, ksz), dtype,
                                       -bound, bound),
                    jax.random.uniform(kb, (cout,), dtype, -bound, bound))

        def linear_init(k, cin, cout):
            kw, kb = jax.random.split(k)
            bound = 1.0 / math.sqrt(cin)
            return (jax.random.uniform(kw, (cin, cout), dtype, -bound, bound),
                    jax.random.uniform(kb, (cout,), dtype, -bound, bound))

        # in_layers: GroupNorm32(32, C) -> SiLU -> Conv3x3(C, Co)
        self.gamma1 = 1.0 + 0.1 * jax.random.normal(ks[0], (C,), dtype)
        self.beta1 = 0.1 * jax.random.normal(ks[1], (C,), dtype)
        self.w1, self.b1 = conv_init(ks[2], Co, C, 3)
        # emb_layers: SiLU -> Linear(E, 2*Co if scale_shift else Co)
        ed = 2 * Co if use_scale_shift_norm else Co
        self.we, self.be = linear_init(ks[3], E, ed)
        # out_layers: GroupNorm32(32, Co) -> SiLU -> Dropout -> Conv3x3(Co, Co)
        self.gamma2 = 1.0 + 0.1 * jax.random.normal(ks[4], (Co,), dtype)
        self.beta2 = 0.1 * jax.random.normal(ks[5], (Co,), dtype)
        # NOTE: PyTorch zero-initializes this conv (zero_module); random init
        # is used here so the numerics test exercises the matmul path.
        self.w2, self.b2 = conv_init(ks[6], Co, Co, 3)
        # skip connection
        if Co == C:
            self.skip = "identity"
        elif use_conv:
            self.skip = "conv3"
            self.ws, self.bs = conv_init(ks[7], Co, C, 3)
        else:
            self.skip = "conv1"
            self.ws, self.bs = conv_init(ks[7], Co, C, 1)

    def __call__(self, x_nchw, emb):
        N, C, H, W = x_nchw.shape
        assert C == self.channels
        Co = self.out_channels
        x_nhwc = jnp.transpose(x_nchw, (0, 2, 3, 1)).astype(jnp.float32)

        # in_layers: fused GN+SiLU kernel, then 3x3 conv on the MXU kernel.
        h = group_norm_silu(x_nhwc, self.gamma1, self.beta1)
        h = conv3x3_nhwc(h, self.w1, self.b1)                      # (N,H,W,Co)

        # emb_layers: SiLU (tiny, glue) + Linear on the matmul kernel (f32).
        e = emb.astype(jnp.float32)
        e = e * jax.nn.sigmoid(e)
        emb_out = _tiled_matmul_bias(e, self.we.astype(jnp.float32), self.be,
                                     mxu_dtype=jnp.float32)        # (N, ed)

        # out_layers (GN + emb modulation + SiLU fused; dropout = identity).
        if self.use_scale_shift_norm:
            h = group_norm_silu(h, self.gamma2, self.beta2,
                                scale=emb_out[:, :Co], shift=emb_out[:, Co:])
        else:
            h = group_norm_silu(h, self.gamma2, self.beta2, add=emb_out)

        # skip connection
        if self.skip == "identity":
            skip = x_nhwc
        elif self.skip == "conv3":
            skip = conv3x3_nhwc(x_nhwc, self.ws, self.bs)
        else:
            skip = conv1x1_nhwc(x_nhwc, self.ws, self.bs)

        # final 3x3 conv with the residual add fused into its epilogue
        out = conv3x3_nhwc(h, self.w2, self.b2, residual_nhwc=skip)
        return jnp.transpose(out, (0, 3, 1, 2))                    # NCHW


# --------------------------- pure-JAX reference ----------------------------

def ref_forward(block, x, emb, conv_dtype=jnp.float32):
    """Pure-JAX mirror of the PyTorch ResBlock._forward (eval mode)."""
    def conv(x_, w, b, pad):
        y = jax.lax.conv_general_dilated(
            x_.astype(conv_dtype), w.astype(conv_dtype), (1, 1),
            ((pad, pad), (pad, pad)),
            dimension_numbers=("NCHW", "OIHW", "NCHW"),
            preferred_element_type=jnp.float32)
        return y + b.reshape(1, -1, 1, 1).astype(jnp.float32)

    def gn(x_, gamma, beta, groups=32, eps=1e-5):
        n, c, hh, ww = x_.shape
        xg = x_.reshape(n, groups, c // groups, hh, ww)
        mean = xg.mean(axis=(2, 3, 4), keepdims=True)
        var = xg.var(axis=(2, 3, 4), keepdims=True)
        xn = ((xg - mean) / jnp.sqrt(var + eps)).reshape(n, c, hh, ww)
        return xn * gamma.reshape(1, -1, 1, 1) + beta.reshape(1, -1, 1, 1)

    silu = lambda t: t * jax.nn.sigmoid(t)
    x = x.astype(jnp.float32)
    emb = emb.astype(jnp.float32)
    Co = block.out_channels

    h = conv(silu(gn(x, block.gamma1, block.beta1)), block.w1, block.b1, 1)
    emb_out = (silu(emb) @ block.we.astype(jnp.float32)
               + block.be.astype(jnp.float32))
    if block.use_scale_shift_norm:
        scale = emb_out[:, :Co, None, None]
        shift = emb_out[:, Co:, None, None]
        h = silu(gn(h, block.gamma2, block.beta2) * (1.0 + scale) + shift)
    else:
        h = h + emb_out[:, :, None, None]
        h = silu(gn(h, block.gamma2, block.beta2))
    h = conv(h, block.w2, block.b2, 1)

    if block.skip == "identity":
        s = x
    elif block.skip == "conv3":
        s = conv(x, block.ws, block.bs, 1)
    else:
        s = conv(x, block.ws, block.bs, 0)
    return s + h


# ------------------------------- main --------------------------------------

if __name__ == "__main__":
    key = jax.random.PRNGKey(0)
    kx, ke, k1, k2, k3 = jax.random.split(key, 5)

    N, C, H, W, E = 2, 32, 16, 16, 16
    x = jax.random.normal(kx, (N, C, H, W), jnp.float32)
    emb = jax.random.normal(ke, (N, E), jnp.float32)

    configs = [
        dict(out_channels=None, use_conv=False, use_scale_shift_norm=False,
             key=k1),   # identity skip, additive emb
        dict(out_channels=64, use_conv=False, use_scale_shift_norm=False,
             key=k2),   # 1x1 skip conv
        dict(out_channels=64, use_conv=True, use_scale_shift_norm=True,
             key=k3),   # 3x3 skip conv + scale/shift norm
    ]
    for cfg in configs:
        kk = cfg.pop("key")
        blk = ResBlock(C, E, dropout=0.0, **cfg, key=kk)
        y = jax.block_until_ready(blk(x, emb))
        assert y.shape == (N, blk.out_channels, H, W)

        # tight check vs a reference using the same bf16 conv operands
        ref_b = ref_forward(blk, x, emb, conv_dtype=jnp.bfloat16)
        assert jnp.allclose(y, ref_b, atol=5e-3, rtol=5e-3), \
            float(jnp.max(jnp.abs(y - ref_b)))
        # loose check vs the full-f32 reference (bf16 MXU operand rounding)
        ref_f = ref_forward(blk, x, emb, conv_dtype=jnp.float32)
        assert jnp.allclose(y, ref_f, atol=5e-2, rtol=5e-2), \
            float(jnp.max(jnp.abs(y - ref_f)))

    print("KERNEL_OK")
</pallas_src>

<mosaic_0001>
module attributes {stable_mosaic.version = 11 : i64} {
  func.func @_gn_mod_silu_kernel(%arg0: i32, %arg1: memref<1x256x32xf32, #tpu.memory_space<vmem>>, %arg2: memref<32x32xf32, #tpu.memory_space<vmem>>, %arg3: memref<1x32xf32, #tpu.memory_space<vmem>>, %arg4: memref<1x32xf32, #tpu.memory_space<vmem>>, %arg5: memref<1x1x32xf32, #tpu.memory_space<vmem>>, %arg6: memref<1x1x32xf32, #tpu.memory_space<vmem>>, %arg7: memref<1x1x32xf32, #tpu.memory_space<vmem>>, %arg8: memref<1x256x32xf32, #tpu.memory_space<vmem>>) attributes {dimension_semantics = [#tpu.dimension_semantics<parallel>], iteration_bounds = array<i64: 2>, scalar_prefetch = 0 : i64, scratch_operands = 0 : i64, tpu.core_type = #tpu.core_type<tc>, window_params = [{transform_indices = @transform_0, window_bounds = array<i64: 1, 256, 32>}, {pipeline_mode = #tpu.pipeline_mode<synchronous>, transform_indices = @transform_1, window_bounds = array<i64: 32, 32>}, {pipeline_mode = #tpu.pipeline_mode<synchronous>, transform_indices = @transform_2, window_bounds = array<i64: 1, 32>}, {pipeline_mode = #tpu.pipeline_mode<synchronous>, transform_indices = @transform_3, window_bounds = array<i64: 1, 32>}, {transform_indices = @transform_4, window_bounds = array<i64: 1, 1, 32>}, {transform_indices = @transform_5, window_bounds = array<i64: 1, 1, 32>}, {transform_indices = @transform_6, window_bounds = array<i64: 1, 1, 32>}, {transform_indices = @transform_7, window_bounds = array<i64: 1, 256, 32>}]} {
    %c0 = arith.constant 0 : index
    %c0_0 = arith.constant 0 : index
    %c0_1 = arith.constant 0 : index
    %0 = vector.load %arg1[%c0, %c0_0, %c0_1] : memref<1x256x32xf32, #tpu.memory_space<vmem>>, vector<1x256x32xf32>
    %1 = vector.shape_cast %0 : vector<1x256x32xf32> to vector<256x32xf32>
    %c0_2 = arith.constant 0 : index
    %c0_3 = arith.constant 0 : index
    %c0_4 = arith.constant 0 : index
    %2 = vector.load %arg5[%c0_2, %c0_3, %c0_4] : memref<1x1x32xf32, #tpu.memory_space<vmem>>, vector<1x1x32xf32>
    %3 = vector.shape_cast %2 : vector<1x1x32xf32> to vector<1x32xf32>
    %4 = vector.broadcast %3 : vector<1x32xf32> to vector<256x32xf32>
    %5 = arith.addf %1, %4 : vector<256x32xf32>
    %cst = arith.constant dense<0.000000e+00> : vector<32xf32>
    %6 = vector.multi_reduction <add>, %5, %cst [0] : vector<256x32xf32> to vector<32xf32>
    %7 = vector.shape_cast %6 : vector<32xf32> to vector<1x32xf32>
    %cst_5 = arith.constant 3.906250e-03 : f32
    %8 = vector.broadcast %cst_5 : f32 to vector<1x32xf32>
    %9 = arith.mulf %7, %8 : vector<1x32xf32>
    %10 = arith.mulf %5, %5 : vector<256x32xf32>
    %cst_6 = arith.constant dense<0.000000e+00> : vector<32xf32>
    %11 = vector.multi_reduction <add>, %10, %cst_6 [0] : vector<256x32xf32> to vector<32xf32>
    %12 = vector.shape_cast %11 : vector<32xf32> to vector<1x32xf32>
    %cst_7 = arith.constant 3.906250e-03 : f32
    %13 = vector.broadcast %cst_7 : f32 to vector<1x32xf32>
    %14 = arith.mulf %12, %13 : vector<1x32xf32>
    %15 = tpu.concatenate %9, %14 in 0 : vector<1x32xf32>, vector<1x32xf32> -> vector<2x32xf32>
    %c0_8 = arith.constant 0 : index
    %c0_9 = arith.constant 0 : index
    %16 = vector.load %arg2[%c0_8, %c0_9] : memref<32x32xf32, #tpu.memory_space<vmem>>, vector<32x32xf32>
    %cst_10 = arith.constant dense<0.000000e+00> : vector<2x32xf32>
    %17 = tpu.matmul %15, %16, %cst_10 {dimension_numbers = #tpu.dot_dimension_numbers<[1], [0], [0], [1], [0, 0, 1, 1], [], []>} : vector<2x32xf32>, vector<32x32xf32>, vector<2x32xf32> -> vector<2x32xf32>
    %18 = vector.extract_strided_slice %17 {offsets = [0, 0], sizes = [1, 32], strides = [1, 1]} : vector<2x32xf32> to vector<1x32xf32>
    %19 = vector.extract_strided_slice %17 {offsets = [1, 0], sizes = [1, 32], strides = [1, 1]} : vector<2x32xf32> to vector<1x32xf32>
    %20 = arith.mulf %18, %18 : vector<1x32xf32>
    %21 = arith.subf %19, %20 : vector<1x32xf32>
    %cst_11 = arith.constant 9.99999974E-6 : f32
    %22 = vector.broadcast %cst_11 : f32 to vector<1x32xf32>
    %23 = arith.addf %21, %22 : vector<1x32xf32>
    %24 = math.rsqrt %23 : vector<1x32xf32>
    %25 = vector.broadcast %18 : vector<1x32xf32> to vector<256x32xf32>
    %26 = arith.subf %5, %25 : vector<256x32xf32>
    %27 = vector.broadcast %24 : vector<1x32xf32> to vector<256x32xf32>
    %28 = arith.mulf %26, %27 : vector<256x32xf32>
    %c0_12 = arith.constant 0 : index
    %c0_13 = arith.constant 0 : index
    %29 = vector.load %arg3[%c0_12, %c0_13] : memref<1x32xf32, #tpu.memory_space<vmem>>, vector<1x32xf32>
    %30 = vector.broadcast %29 : vector<1x32xf32> to vector<256x32xf32>
    %31 = arith.mulf %28, %30 : vector<256x32xf32>
    %c0_14 = arith.constant 0 : index
    %c0_15 = arith.constant 0 : index
    %32 = vector.load %arg4[%c0_14, %c0_15] : memref<1x32xf32, #tpu.memory_space<vmem>>, vector<1x32xf32>
    %33 = vector.broadcast %32 : vector<1x32xf32> to vector<256x32xf32>
    %34 = arith.addf %31, %33 : vector<256x32xf32>
    %c0_16 = arith.constant 0 : index
    %c0_17 = arith.constant 0 : index
    %c0_18 = arith.constant 0 : index
    %35 = vector.load %arg6[%c0_16, %c0_17, %c0_18] : memref<1x1x32xf32, #tpu.memory_space<vmem>>, vector<1x1x32xf32>
    %36 = vector.shape_cast %35 : vector<1x1x32xf32> to vector<1x32xf32>
    %cst_19 = arith.constant 1.000000e+00 : f32
    %37 = vector.broadcast %cst_19 : f32 to vector<1x32xf32>
    %38 = arith.addf %37, %36 : vector<1x32xf32>
    %39 = vector.broadcast %38 : vector<1x32xf32> to vector<256x32xf32>
    %40 = arith.mulf %34, %39 : vector<256x32xf32>
    %c0_20 = arith.constant 0 : index
    %c0_21 = arith.constant 0 : index
    %c0_22 = arith.constant 0 : index
    %41 = vector.load %arg7[%c0_20, %c0_21, %c0_22] : memref<1x1x32xf32, #tpu.memory_space<vmem>>, vector<1x1x32xf32>
    %42 = vector.shape_cast %41 : vector<1x1x32xf32> to vector<1x32xf32>
    %43 = vector.broadcast %42 : vector<1x32xf32> to vector<256x32xf32>
    %44 = arith.addf %40, %43 : vector<256x32xf32>
    %45 = arith.negf %44 : vector<256x32xf32>
    %46 = math.exp %45 : vector<256x32xf32>
    %cst_23 = arith.constant 1.000000e+00 : f32
    %47 = vector.broadcast %cst_23 : f32 to vector<256x32xf32>
    %48 = arith.addf %47, %46 : vector<256x32xf32>
    %49 = arith.divf %47, %48 : vector<256x32xf32>
    %50 = arith.mulf %44, %49 : vector<256x32xf32>
    %c0_24 = arith.constant 0 : index
    %c0_25 = arith.constant 0 : index
    %c0_26 = arith.constant 0 : index
    %51 = vector.load %arg8[%c0_24, %c0_25, %c0_26] : memref<1x256x32xf32, #tpu.memory_space<vmem>>, vector<1x256x32xf32>
    %52 = vector.shape_cast %51 : vector<1x256x32xf32> to vector<256x32xf32>
    %53 = vector.shape_cast %50 : vector<256x32xf32> to vector<1x256x32xf32>
    tpu.vector_store %arg8[%c0_24, %c0_25, %c0_26], %53 {strides = array<i32>} : memref<1x256x32xf32, #tpu.memory_space<vmem>>, vector<1x256x32xf32>,
    return
  }
  func.func @transform_0(%arg0: i32) -> (i32, i32, i32) {
    %c0_i32 = arith.constant 0 : i32
    %c0_i32_0 = arith.constant 0 : i32
    %c0_i32_1 = arith.constant 0 : i32
    return %arg0, %c0_i32, %c0_i32_0 : i32, i32, i32
  }
  func.func @transform_1(%arg0: i32) -> (i32, i32) {
    %c0_i32 = arith.constant 0 : i32
    %c0_i32_0 = arith.constant 0 : i32
    %c0_i32_1 = arith.constant 0 : i32
    return %c0_i32, %c0_i32_0 : i32, i32
  }
  func.func @transform_2(%arg0: i32) -> (i32, i32) {
    %c0_i32 = arith.constant 0 : i32
    %c0_i32_0 = arith.constant 0 : i32
    %c0_i32_1 = arith.constant 0 : i32
    return %c0_i32, %c0_i32_0 : i32, i32
  }
  func.func @transform_3(%arg0: i32) -> (i32, i32) {
    %c0_i32 = arith.constant 0 : i32
    %c0_i32_0 = arith.constant 0 : i32
    %c0_i32_1 = arith.constant 0 : i32
    return %c0_i32, %c0_i32_0 : i32, i32
  }
  func.func @transform_4(%arg0: i32) -> (i32, i32, i32) {
    %c0_i32 = arith.constant 0 : i32
    %c0_i32_0 = arith.constant 0 : i32
    %c0_i32_1 = arith.constant 0 : i32
    return %arg0, %c0_i32, %c0_i32_0 : i32, i32, i32
  }
  func.func @transform_5(%arg0: i32) -> (i32, i32, i32) {
    %c0_i32 = arith.constant 0 : i32
    %c0_i32_0 = arith.constant 0 : i32
    %c0_i32_1 = arith.constant 0 : i32
    return %arg0, %c0_i32, %c0_i32_0 : i32, i32, i32
  }
  func.func @transform_6(%arg0: i32) -> (i32, i32, i32) {
    %c0_i32 = arith.constant 0 : i32
    %c0_i32_0 = arith.constant 0 : i32
    %c0_i32_1 = arith.constant 0 : i32
    return %arg0, %c0_i32, %c0_i32_0 : i32, i32, i32
  }
  func.func @transform_7(%arg0: i32) -> (i32, i32, i32) {
    %c0_i32 = arith.constant 0 : i32
    %c0_i32_0 = arith.constant 0 : i32
    %c0_i32_1 = arith.constant 0 : i32
    return %arg0, %c0_i32, %c0_i32_0 : i32, i32, i32
  }
}

</mosaic_0001>

<bundles_post_ra>
// kernel: tpu_custom_call.1
= control target key start
LH: loop header
LB: loop body
LE: loop exit
PB: predicated region body
PF: predicated region fallthrough
CT: control target
= control target key end

     0   :  { %s1482_s24 = smov 0   ;;  %s2159_s0 = inlined_call_operand.vmem [shape: f32[2,256,32], index: 0, kind: input, shape index: {}]   ;;  %s2160_s1 = inlined_call_operand.vmem [shape: f32[32,32], index: 1, kind: input, shape index: {}]   ;;  %s2161_s2 = inlined_call_operand.vmem [shape: f32[1,32], index: 2, kind: input, shape index: {}]   ;;  %s2162_s3 = inlined_call_operand.vmem [shape: f32[1,32], index: 3, kind: input, shape index: {}]   ;;  %s2163_s4 = inlined_call_operand.vmem [shape: f32[2,1,32], index: 4, kind: input, shape index: {}]   ;;  %s2164_s5 = inlined_call_operand.vmem [shape: f32[2,1,32], index: 5, kind: input, shape index: {}]   ;;  %s2165_s6 = inlined_call_operand.vmem [shape: f32[2,1,32], index: 6, kind: input, shape index: {}]   ;;  %s2166_s7 = inlined_call_operand.vmem [shape: f32[2,256,32], index: 7, kind: output, shape index: {}]  }
   0x1 LB: > { %s1218_s25 = sadd.s32 4294967295, %s1437_s24   ;;  %p1222_p0 = scmp.ge.s32.totalorder %s1437_s24, 1  ;;  %s1437_s24 = sphi %s1482_s24, %s17_s24  }
   0x2   : > { %p261_p1 = scmp.lt.s32.totalorder %s1437_s24, 3 }
   0x4   : > { %p262_p2 = pnand %p1222_p0, %p261_p1 }
   0x6   : > { %265 = sbr.rel (%p262_p2) target bundleno = 465 (0x1d1), region = 48 }
   0xd   : > { %p302_p3 = scmp.lt.s32.totalorder %s1218_s25, 1  ;;  %v567_v0 = vld [vmem:[%s2160_s1] sm:$0xff]  ;;  %v568_v1 = vld [vmem:[%s2160_s1 + $0x8] sm:$0xff]  ;;  %v569_v2 = vld [vmem:[%s2160_s1 + $0x10] sm:$0xff]  ;;  %v1439_v5 = vmov 0.0|0.0   ;;  %vm1440_vm0 = vmmov 0  }
   0xe   : > { %v570_v3 = vld [vmem:[%s2160_s1 + $0x18] sm:$0xff]  ;;  %v1285_v4 = vpack.c.bf16 %v568_v1, %v567_v0  ;;  %1284 = vmatprep.subr.bf16.mxu0 %v1439_v5  ;;  %v1441_v6 = vmov 0.0   ;;  %vm392_vm1 = vcmask 261120   ;;  %vm565_vm2 = vcmask 1040384  }
   0xf   : > { %s2174_s25 = smov (!%p302_p3, %s1218_s25), 1  ;;  %1281 = vmatprep.mubr.msk.f32.mxu0 %vm1440_vm0, %v1441_v6  ;;  %v1288_v7 = vpack.c.bf16 %v570_v3, %v569_v2 }
  0x10   : > { %1286 = vmatpush3.bf16.msra.mxu0 %v1285_v4  ;;  %s1266_s11 = sshll.u32 %s2174_s25, 8  ;;  %s309_s14 = scalar_lea.vmem %s2163_s4, %s2174_s25 }
  0x11   : > { %1287 = vmatprep.subr.bf16.mxu0 %v1439_v5  ;;  %s1514_s17 = scalar_lea.vmem %s2159_s0, %s1266_s11  ;;  %v1516_v8 = vld [vmem:[%s309_s14] ss:$0 sm:$0xff]  ;;  %s312_s20 = scalar_lea.vmem %s2164_s5, %s2174_s25 }
  0x12   : > { %v321_v9 = vld [vmem:[%s1514_s17] sm:$0xff]  ;;  %v322_v10 = vld [vmem:[%s1514_s17 + $0x8] sm:$0xff]  ;;  %v323_v11 = vld [vmem:[%s1514_s17 + $0x10] sm:$0xff]  ;;  %s315_s29 = scalar_lea.vmem %s2165_s6, %s2174_s25  ;;  %s2046_s9 = scalar_lea.vmem %s2166_s7, %s1266_s11 }
  0x13   : > { %v1522_v12 = vadd.f32 %v1516_v8, %v321_v9  ;;  %v1525_v13 = vadd.f32 %v1516_v8, %v322_v10  ;;  %v324_v14 = vld [vmem:[%s1514_s17 + $0x18] sm:$0xff]  ;;  %v1531_v16 = vadd.f32 %v1516_v8, %v323_v11  ;;  %v325_v18 = vld [vmem:[%s1514_s17 + $0x20] sm:$0xff]  ;;  %v326_v20 = vld [vmem:[%s1514_s17 + $0x28] sm:$0xff] }
  0x14   : > { %1289 = vmatpush3.bf16.msra.mxu0 %v1288_v7  ;;  %v1538_v21 = vadd.f32 %v1516_v8, %v324_v14  ;;  %v327_v23 = vld [vmem:[%s1514_s17 + $0x30] sm:$0xff]  ;;  %v1544_v25 = vadd.f32 %v1516_v8, %v325_v18  ;;  %v328_v27 = vld [vmem:[%s1514_s17 + $0x38] sm:$0xff]  ;;  %v1550_v28 = vadd.f32 %v1516_v8, %v326_v20  ;;  %v329_v32 = vld [vmem:[%s1514_s17 + $0x40] sm:$0xff] }
  0x15   : > { %v393_v15 = vsel %vm392_vm1, %v1522_v12, 0.0  ;;  %v394_v17 = vsel %vm392_vm1, %v1525_v13, 0.0  ;;  %v396_v22 = vsel %vm392_vm1, %v1531_v16, 0.0  ;;  %v1553_v30 = vadd.f32 %v1516_v8, %v327_v23  ;;  %v330_v37 = vld [vmem:[%s1514_s17 + $0x48] sm:$0xff]  ;;  %v331_v41 = vld [vmem:[%s1514_s17 + $0x50] sm:$0xff]  ;;  %v332_v45 = vld [vmem:[%s1514_s17 + $0x58] sm:$0xff] }
  0x16   : > { %v395_v19 = vadd.f32 %v394_v17, %v393_v15  ;;  %v398_v26 = vsel %vm392_vm1, %v1538_v21, 0.0  ;;  %v400_v31 = vsel %vm392_vm1, %v1544_v25, 0.0  ;;  %v402_v34 = vsel %vm392_vm1, %v1550_v28, 0.0  ;;  %v333_v49 = vld [vmem:[%s1514_s17 + $0x60] sm:$0xff]  ;;  %v334_v53 = vld [vmem:[%s1514_s17 + $0x68] sm:$0xff]  ;;  %v335_v57 = vld [vmem:[%s1514_s17 + $0x70] sm:$0xff] }
  0x17   : > { %v1561_v35 = vadd.f32 %v1516_v8, %v328_v27  ;;  %v404_v36 = vsel %vm392_vm1, %v1553_v30, 0.0  ;;  %v1567_v39 = vadd.f32 %v1516_v8, %v329_v32  ;;  %v1573_v43 = vadd.f32 %v1516_v8, %v330_v37  ;;  %v336_v59 = vld [vmem:[%s1514_s17 + $0x78] sm:$0xff]  ;;  %v337_v5 = vld [vmem:[%s1514_s17 + $0x80] sm:$0xff]  ;;  %v338_v15 = vld [vmem:[%s1514_s17 + $0x88] sm:$0xff] }
  0x18   : > { %v397_v24 = vadd.f32 %v396_v22, %v395_v19  ;;  %v1579_v47 = vadd.f32 %v1516_v8, %v331_v41  ;;  %v1585_v51 = vadd.f32 %v1516_v8, %v332_v45  ;;  %v1591_v55 = vadd.f32 %v1516_v8, %v333_v49  ;;  %v341_v45 = vld [vmem:[%s1514_s17 + $0xa0] sm:$0xff] }
  0x19   : > { %v406_v40 = vsel %vm392_vm1, %v1561_v35, 0.0  ;;  %v408_v44 = vsel %vm392_vm1, %v1567_v39, 0.0  ;;  %v410_v48 = vsel %vm392_vm1, %v1573_v43, 0.0  ;;  %v1598_v60 = vadd.f32 %v1516_v8, %v334_v53 }
  0x1a   : > { %v399_v29 = vadd.f32 %v398_v26, %v397_v24  ;;  %v412_v52 = vsel %vm392_vm1, %v1579_v47, 0.0  ;;  %v414_v56 = vsel %vm392_vm1, %v1585_v51, 0.0  ;;  %v416_v61 = vsel %vm392_vm1, %v1591_v55, 0.0  ;;  %v339_v26 = vld [vmem:[%s1514_s17 + $0x90] sm:$0xff] }
  0x1b   : > { %v463_v62 = vmul.f32 %v1522_v12, %v1522_v12  ;;  %v464_v63 = vmul.f32 %v1525_v13, %v1525_v13  ;;  %v465_v1 = vmul.f32 %v1531_v16, %v1531_v16  ;;  %v1609_v2 = vadd.f32 %v1516_v8, %v335_v57 }
  0x1c   : > { %v401_v33 = vadd.f32 %v400_v31, %v399_v29  ;;  %v418_v3 = vsel %vm392_vm1, %v1598_v60, 0.0  ;;  %v466_v4 = vmul.f32 %v1538_v21, %v1538_v21  ;;  %v1617_v6 = vadd.f32 %v1516_v8, %v336_v59 }
  0x1d   : > { %v420_v9 = vsel %vm392_vm1, %v1609_v2, 0.0  ;;  %v467_v10 = vmul.f32 %v1544_v25, %v1544_v25  ;;  %v495_v11 = vsel %vm392_vm1, %v463_v62, 0.0  ;;  %v496_v14 = vsel %vm392_vm1, %v464_v63, 0.0  ;;  %v343_v63 = vld [vmem:[%s1514_s17 + $0xb0] sm:$0xff] }
  0x1e   : > { %v403_v38 = vadd.f32 %v402_v34, %v401_v33  ;;  %v497_v18 = vadd.f32 %v496_v14, %v495_v11  ;;  %v498_v19 = vsel %vm392_vm1, %v465_v1, 0.0  ;;  %v1628_v20 = vadd.f32 %v1516_v8, %v337_v5 }
  0x1f   : > { %v422_v22 = vsel %vm392_vm1, %v1617_v6, 0.0  ;;  %v468_v23 = vmul.f32 %v1550_v28, %v1550_v28  ;;  %v500_v24 = vsel %vm392_vm1, %v466_v4, 0.0  ;;  %v1637_v31 = vadd.f32 %v1516_v8, %v338_v15 }
  0x20   : > { %v405_v42 = vadd.f32 %v404_v36, %v403_v38  ;;  %v499_v29 = vadd.f32 %v498_v19, %v497_v18  ;;  %v424_v32 = vsel %vm392_vm1, %v1628_v20, 0.0  ;;  %v469_v33 = vmul.f32 %v1553_v30, %v1553_v30  ;;  %v340_v36 = vld [vmem:[%s1514_s17 + $0x98] sm:$0xff]  ;;  %v345_v19 = vld [vmem:[%s1514_s17 + $0xc0] sm:$0xff] }
  0x21   : > { %v502_v34 = vsel %vm392_vm1, %v467_v10, 0.0  ;;  %v426_v41 = vsel %vm392_vm1, %v1637_v31, 0.0  ;;  %v1655_v49 = vadd.f32 %v1516_v8, %v340_v36  ;;  %v473_v5 = vmul.f32 %v1579_v47, %v1579_v47 }
  0x22   : > { %v407_v46 = vadd.f32 %v406_v40, %v405_v42  ;;  %v501_v38 = vadd.f32 %v500_v24, %v499_v29  ;;  %v1646_v40 = vadd.f32 %v1516_v8, %v339_v26  ;;  %v470_v42 = vmul.f32 %v1561_v35, %v1561_v35 }
  0x23   : > { %v506_v53 = vsel %vm392_vm1, %v469_v33, 0.0  ;;  %v430_v59 = vsel %vm392_vm1, %v1655_v49, 0.0  ;;  %v1682_v14 = vadd.f32 %v1516_v8, %v343_v63  ;;  %v514_v29 = vsel %vm392_vm1, %v473_v5, 0.0 }
  0x24   : > { %v409_v50 = vadd.f32 %v408_v44, %v407_v46  ;;  %v504_v44 = vsel %vm392_vm1, %v468_v23, 0.0  ;;  %v508_v62 = vsel %vm392_vm1, %v470_v42, 0.0  ;;  %v1700_v36 = vadd.f32 %v1516_v8, %v345_v19  ;;  %v347_v42 = vld [vmem:[%s1514_s17 + $0xd0] sm:$0xff] }
  0x25   : > { %v436_v26 = vsel %vm392_vm1, %v1682_v14, 0.0  ;;  %v479_v5 = vmul.f32 %v1628_v20, %v1628_v20 }
  0x26   : > { %v411_v54 = vadd.f32 %v410_v48, %v409_v50  ;;  %v503_v48 = vadd.f32 %v502_v34, %v501_v38  ;;  %v428_v50 = vsel %vm392_vm1, %v1646_v40, 0.0  ;;  %v476_v38 = vmul.f32 %v1598_v60, %v1598_v60 }
  0x28   : > { %v413_v58 = vadd.f32 %v412_v52, %v411_v54  ;;  %v471_v52 = vmul.f32 %v1567_v39, %v1567_v39  ;;  %v342_v54 = vld [vmem:[%s1514_s17 + $0xa8] sm:$0xff]  ;;  %v505_v57 = vadd.f32 %v504_v44, %v503_v48  ;;  %v440_v48 = vsel %vm392_vm1, %v1700_v36, 0.0 }
  0x2a   : > { %v415_v0 = vadd.f32 %v414_v56, %v413_v58  ;;  %v1664_v58 = vadd.f32 %v1516_v8, %v341_v45  ;;  %v507_v1 = vadd.f32 %v506_v53, %v505_v57  ;;  %v348_v53 = vld [vmem:[%s1514_s17 + $0xd8] sm:$0xff]  ;;  %v1718_v57 = vadd.f32 %v1516_v8, %v347_v42 }
  0x2c   : > { %v417_v7 = vadd.f32 %v416_v61, %v415_v0  ;;  %v472_v61 = vmul.f32 %v1573_v43, %v1573_v43  ;;  %v432_v4 = vsel %vm392_vm1, %v1664_v58, 0.0  ;;  %v509_v11 = vadd.f32 %v508_v62, %v507_v1 }
  0x2d   : > { %v520_v62 = vsel %vm392_vm1, %v476_v38, 0.0  ;;  %v1726_v1 = vadd.f32 %v1516_v8, %v348_v53 }
  0x2e   : > { %v419_v17 = vadd.f32 %v418_v3, %v417_v7  ;;  %v1673_v3 = vadd.f32 %v1516_v8, %v342_v54  ;;  %v510_v7 = vsel %vm392_vm1, %v471_v52, 0.0  ;;  %v512_v18 = vsel %vm392_vm1, %v472_v61, 0.0 }
  0x2f   : > { %v511_v23 = vadd.f32 %v510_v7, %v509_v11  ;;  %v478_v61 = vmul.f32 %v1617_v6, %v1617_v6 }
  0x30   : > { %v421_v27 = vadd.f32 %v420_v9, %v419_v17  ;;  %v344_v9 = vld [vmem:[%s1514_s17 + $0xb8] sm:$0xff]  ;;  %v434_v15 = vsel %vm392_vm1, %v1673_v3, 0.0  ;;  %v474_v17 = vmul.f32 %v1585_v51, %v1585_v51 }
  0x31   : > { %v1691_v24 = vadd.f32 %v1516_v8, %v344_v9  ;;  %v513_v34 = vadd.f32 %v512_v18, %v511_v23  ;;  %v349_v9 = vld [vmem:[%s1514_s17 + $0xe0] sm:$0xff]  ;;  %v524_v18 = vsel %vm392_vm1, %v478_v61, 0.0 }
  0x32   : > { %v423_v37 = vadd.f32 %v422_v22, %v421_v27  ;;  %v475_v27 = vmul.f32 %v1591_v55, %v1591_v55  ;;  %v1740_v23 = vadd.f32 %v1516_v8, %v349_v9 }
  0x33   : > { %v515_v45 = vadd.f32 %v514_v29, %v513_v34  ;;  %v350_v29 = vld [vmem:[%s1514_s17 + $0xe8] sm:$0xff]  ;;  %v486_v9 = vmul.f32 %v1691_v24, %v1691_v24 }
  0x34   : > { %v425_v46 = vadd.f32 %v424_v32, %v423_v37  ;;  %v346_v32 = vld [vmem:[%s1514_s17 + $0xc8] sm:$0xff]  ;;  %v438_v37 = vsel %vm392_vm1, %v1691_v24, 0.0  ;;  %v518_v52 = vsel %vm392_vm1, %v475_v27, 0.0  ;;  %v526_v27 = vsel %vm392_vm1, %v479_v5, 0.0 }
  0x35   : > { %v448_v34 = vsel %vm392_vm1, %v1740_v23, 0.0  ;;  %v1752_v42 = vadd.f32 %v1516_v8, %v350_v29  ;;  %v540_v29 = vsel %vm392_vm1, %v486_v9, 0.0 }
  0x36   : > { %v427_v56 = vadd.f32 %v426_v41, %v425_v46  ;;  %v516_v41 = vsel %vm392_vm1, %v474_v17, 0.0  ;;  %v1709_v46 = vadd.f32 %v1516_v8, %v346_v32  ;;  %v480_v17 = vmul.f32 %v1637_v31, %v1637_v31 }
  0x37   : > { %v450_v53 = vsel %vm392_vm1, %v1752_v42, 0.0 }
  0x38   : > { %v429_v0 = vadd.f32 %v428_v50, %v427_v56  ;;  %v477_v50 = vmul.f32 %v1609_v2, %v1609_v2  ;;  %v517_v56 = vadd.f32 %v516_v41, %v515_v45  ;;  %v528_v38 = vsel %vm392_vm1, %v480_v17, 0.0 }
  0x39   : > { %v487_v17 = vmul.f32 %v1700_v36, %v1700_v36 }
  0x3a   : > { %v431_v10 = vadd.f32 %v430_v59, %v429_v0  ;;  %v442_v59 = vsel %vm392_vm1, %v1709_v46, 0.0  ;;  %v519_v0 = vadd.f32 %v518_v52, %v517_v56  ;;  %v522_v7 = vsel %vm392_vm1, %v477_v50, 0.0 }
  0x3c   : > { %v433_v22 = vadd.f32 %v432_v4, %v431_v10  ;;  %v444_v4 = vsel %vm392_vm1, %v1718_v57, 0.0  ;;  %v521_v11 = vadd.f32 %v520_v62, %v519_v0  ;;  %v485_v62 = vmul.f32 %v1682_v14, %v1682_v14  ;;  %v352_v0 = vld [vmem:[%s1514_s17 + $0xf8] sm:$0xff] }
  0x3e   : > { %v435_v33 = vadd.f32 %v434_v15, %v433_v22  ;;  %v446_v15 = vsel %vm392_vm1, %v1726_v1, 0.0  ;;  %v523_v22 = vadd.f32 %v522_v7, %v521_v11 }
  0x40   : > { %v437_v44 = vadd.f32 %v436_v26, %v435_v33  ;;  %v481_v26 = vmul.f32 %v1646_v40, %v1646_v40  ;;  %v525_v33 = vadd.f32 %v524_v18, %v523_v22  ;;  %v538_v18 = vsel %vm392_vm1, %v485_v62, 0.0 }
  0x42   : > { %v439_v54 = vadd.f32 %v438_v37, %v437_v44  ;;  %v482_v37 = vmul.f32 %v1655_v49, %v1655_v49  ;;  %v527_v41 = vadd.f32 %v526_v27, %v525_v33  ;;  %v483_v44 = vmul.f32 %v1664_v58, %v1664_v58 }
  0x43   : > { %v530_v45 = vsel %vm392_vm1, %v481_v26, 0.0  ;;  %v488_v27 = vmul.f32 %v1709_v46, %v1709_v46  ;;  %v542_v33 = vsel %vm392_vm1, %v487_v17, 0.0 }
  0x44   : > { %v441_v63 = vadd.f32 %v440_v48, %v439_v54  ;;  %v351_v48 = vld [vmem:[%s1514_s17 + $0xf0] sm:$0xff]  ;;  %v529_v52 = vadd.f32 %v528_v38, %v527_v41  ;;  %v484_v54 = vmul.f32 %v1673_v3, %v1673_v3  ;;  %v532_v56 = vsel %vm392_vm1, %v482_v37, 0.0 }
  0x45   : > { %v1764_v61 = vadd.f32 %v1516_v8, %v351_v48  ;;  %v490_v38 = vmul.f32 %v1726_v1, %v1726_v1  ;;  %v544_v41 = vsel %vm392_vm1, %v488_v27, 0.0 }
  0x46   : > { %v443_v10 = vadd.f32 %v442_v59, %v441_v63  ;;  %v531_v59 = vadd.f32 %v530_v45, %v529_v52  ;;  %v534_v63 = vsel %vm392_vm1, %v483_v44, 0.0  ;;  %v491_v45 = vmul.f32 %v1740_v23, %v1740_v23 }
  0x47   : > { %v452_v7 = vsel %vm392_vm1, %v1764_v61, 0.0 }
  0x48   : > { %v445_v19 = vadd.f32 %v444_v4, %v443_v10  ;;  %v533_v5 = vadd.f32 %v532_v56, %v531_v59  ;;  %v536_v10 = vsel %vm392_vm1, %v484_v54, 0.0  ;;  %v548_v54 = vsel %vm392_vm1, %v490_v38, 0.0 }
  0x49   : > { %v493_v59 = vmul.f32 %v1764_v61, %v1764_v61  ;;  %v550_v62 = vsel %vm392_vm1, %v491_v45, 0.0  ;;  %v651_v45 = vlaneseq }
  0x4a   : > { %v447_v32 = vadd.f32 %v446_v15, %v445_v19  ;;  %v535_v11 = vadd.f32 %v534_v63, %v533_v5  ;;  %v1776_v15 = vadd.f32 %v1516_v8, %v352_v0  ;;  %v489_v8 = vmul.f32 %v1718_v57, %v1718_v57 }
  0x4b   : > { %v554_v9 = vsel %vm392_vm1, %v493_v59, 0.0 }
  0x4c   : > { %v449_v50 = vadd.f32 %v448_v34, %v447_v32  ;;  %v537_v22 = vadd.f32 %v536_v10, %v535_v11  ;;  %v454_v26 = vsel %vm392_vm1, %v1776_v15, 0.0  ;;  %v546_v48 = vsel %vm392_vm1, %v489_v8, 0.0 }
  0x4e   : > { %v451_v4 = vadd.f32 %v450_v53, %v449_v50  ;;  %v539_v32 = vadd.f32 %v538_v18, %v537_v22  ;;  %v492_v53 = vmul.f32 %v1752_v42, %v1752_v42 }
  0x50   : > { %v453_v19 = vadd.f32 %v452_v7, %v451_v4  ;;  %v541_v37 = vadd.f32 %v540_v29, %v539_v32  ;;  %v494_v4 = vmul.f32 %v1776_v15, %v1776_v15  ;;  %v552_v5 = vsel %vm392_vm1, %v492_v53, 0.0 }
  0x51   : > { %v652_v53 = vshrl.u32 %v651_v45, 7 }
  0x52   : > { %v455_v34 = vadd.f32 %v454_v26, %v453_v19  ;;  %v543_v44 = vadd.f32 %v542_v33, %v541_v37  ;;  %v556_v17 = vsel %vm392_vm1, %v494_v4, 0.0 }
  0x53   : > { %v653_v59 = vsub.s32 0, %v652_v53 }
  0x54   : > { %v456_v50 = vrot.slane %v455_v34, 4  ;;  %v545_v52 = vadd.f32 %v544_v41, %v543_v44 }
  0x56   : > { %v547_v56 = vadd.f32 %v546_v48, %v545_v52  ;;  %v457_v63 = vadd.f32 %v456_v50, %v455_v34 }
  0x58   : > { %v549_v0 = vadd.f32 %v548_v54, %v547_v56  ;;  %v458_v10 = vrot.slane %v457_v63, 2 }
  0x5a   : > { %v551_v7 = vadd.f32 %v550_v62, %v549_v0  ;;  %v459_v19 = vadd.f32 %v458_v10, %v457_v63  ;;  %v801_v62 = vld [vmem:[%s312_s20] sm:$0x1] }
  0x5b   : > { %v802_v4 = vadd.f32 1.0, %v801_v62  ;;  %v1229_v62 = vld [vmem:[%s2161_s2] ss:$0 sm:$0xff] }
  0x5c   : > { %v553_v11 = vadd.f32 %v552_v5, %v551_v7  ;;  %v460_v27 = vrot.slane %v459_v19, 1  ;;  %v689_v7 = vsub.s32 1, %v652_v53 }
  0x5e   : > { %v555_v18 = vadd.f32 %v554_v9, %v553_v11  ;;  %v461_v8 = vadd.f32 %v460_v27, %v459_v19  ;;  %v1815_v9 = vrot.slane %v802_v4, %v653_v59 }
  0x60   : > { %v557_v22 = vadd.f32 %v556_v17, %v555_v18  ;;  %v462_v37 = vmul.f32 0.00390625, %v461_v8 }
  0x62   : > { %v558_v26 = vrot.slane %v557_v22, 4 }
  0x64   : > { %v559_v29 = vadd.f32 %v558_v26, %v557_v22 }
  0x66   : > { %v560_v32 = vrot.slane %v559_v29, 2 }
  0x68   : > { %v561_v33 = vadd.f32 %v560_v32, %v559_v29 }
  0x6a   : > { %v562_v34 = vrot.slane %v561_v33, 1 }
  0x6c   : > { %v563_v38 = vadd.f32 %v562_v34, %v561_v33 }
  0x6e   : > { %v564_v41 = vmul.f32 0.00390625, %v563_v38 }
  0x70   : > { %v566_v44 = vsel %vm565_vm2, %v462_v37, %v564_v41 }
  0x71   : > { %1282 = vmatmul.mubr.msk.f32.vlgmr.msra.gmra.mrb[0].mxu0 %vm392_vm1, %v566_v44 }
 0x144   : > { %v640_v48 = vpop.f32.mrb[0].mxu0 }
 0x145   : > { %v1283_v50 = vpop.f32.mrb[1].mxu0  ;;  %v644_v52 = vmul.f32 %v640_v48, %v640_v48  ;;  %v1811_v0 = vrot.slane %v640_v48, %v653_v59 }
 0x147   : > { %v646_v54 = vrot.slane %v644_v52, 7  ;;  %v655_v5 = vsub.f32 %v1522_v12, %v1811_v0  ;;  %v656_v10 = vsub.f32 %v1525_v13, %v1811_v0  ;;  %v657_v11 = vsub.f32 %v1531_v16, %v1811_v0 }
 0x148   : > { %v658_v17 = vsub.f32 %v1538_v21, %v1811_v0  ;;  %v659_v18 = vsub.f32 %v1544_v25, %v1811_v0  ;;  %v660_v19 = vsub.f32 %v1550_v28, %v1811_v0  ;;  %v661_v12 = vsub.f32 %v1553_v30, %v1811_v0 }
 0x149   : > { %v648_v56 = vsub.f32 %v640_v48, %v646_v54  ;;  %v662_v22 = vsub.f32 %v1561_v35, %v1811_v0  ;;  %v663_v13 = vsub.f32 %v1567_v39, %v1811_v0  ;;  %v664_v16 = vsub.f32 %v1573_v43, %v1811_v0 }
 0x14a   : > { %v665_v21 = vsub.f32 %v1579_v47, %v1811_v0  ;;  %v666_v25 = vsub.f32 %v1585_v51, %v1811_v0  ;;  %v667_v28 = vsub.f32 %v1591_v55, %v1811_v0  ;;  %v668_v30 = vsub.f32 %v1598_v60, %v1811_v0 }
 0x14b   : > { %v649_v63 = vadd.f32 1e-05, %v648_v56  ;;  %v669_v35 = vsub.f32 %v1609_v2, %v1811_v0  ;;  %v670_v39 = vsub.f32 %v1617_v6, %v1811_v0  ;;  %v671_v43 = vsub.f32 %v1628_v20, %v1811_v0 }
 0x14c   : > { %v672_v47 = vsub.f32 %v1637_v31, %v1811_v0  ;;  %v673_v51 = vsub.f32 %v1646_v40, %v1811_v0  ;;  %v674_v55 = vsub.f32 %v1655_v49, %v1811_v0  ;;  %v675_v60 = vsub.f32 %v1664_v58, %v1811_v0 }
 0x14d   : > { %1301 = vrsqrt.f32 %v649_v63  ;;  %v676_v2 = vsub.f32 %v1673_v3, %v1811_v0  ;;  %v677_v6 = vsub.f32 %v1682_v14, %v1811_v0  ;;  %v678_v20 = vsub.f32 %v1691_v24, %v1811_v0 }
 0x14e   : > { %v679_v31 = vsub.f32 %v1700_v36, %v1811_v0  ;;  %v680_v40 = vsub.f32 %v1709_v46, %v1811_v0  ;;  %v681_v49 = vsub.f32 %v1718_v57, %v1811_v0  ;;  %v682_v58 = vsub.f32 %v1726_v1, %v1811_v0 }
 0x14f   : > { %v683_v3 = vsub.f32 %v1740_v23, %v1811_v0  ;;  %v684_v14 = vsub.f32 %v1752_v42, %v1811_v0  ;;  %v685_v24 = vsub.f32 %v1764_v61, %v1811_v0  ;;  %v686_v36 = vsub.f32 %v1776_v15, %v1811_v0 }
 0x157   : > { %v1302_v26 = vpop.eup %1301 }
 0x158   : > { %v690_v27 = vrot.slane %v1302_v26, %v689_v7 }
 0x15a   : > { %v691_v46 = vmul.f32 %v690_v27, %v655_v5  ;;  %v692_v29 = vmul.f32 %v690_v27, %v656_v10  ;;  %v693_v32 = vmul.f32 %v690_v27, %v657_v11  ;;  %v694_v57 = vmul.f32 %v690_v27, %v658_v17 }
 0x15b   : > { %v695_v8 = vmul.f32 %v690_v27, %v659_v18  ;;  %v696_v33 = vmul.f32 %v690_v27, %v660_v19  ;;  %v697_v1 = vmul.f32 %v690_v27, %v661_v12  ;;  %v698_v34 = vmul.f32 %v690_v27, %v662_v22 }
 0x15c   : > { %v699_v37 = vmul.f32 %v690_v27, %v663_v13  ;;  %v700_v38 = vmul.f32 %v690_v27, %v664_v16  ;;  %v701_v23 = vmul.f32 %v690_v27, %v665_v21  ;;  %v702_v41 = vmul.f32 %v690_v27, %v666_v25 }
 0x15d   : > { %v703_v44 = vmul.f32 %v690_v27, %v667_v28  ;;  %v704_v42 = vmul.f32 %v690_v27, %v668_v30  ;;  %v705_v45 = vmul.f32 %v690_v27, %v669_v35  ;;  %v706_v48 = vmul.f32 %v690_v27, %v670_v39 }
 0x15e   : > { %v707_v61 = vmul.f32 %v690_v27, %v671_v43  ;;  %v708_v50 = vmul.f32 %v690_v27, %v672_v47  ;;  %v709_v52 = vmul.f32 %v690_v27, %v673_v51  ;;  %v710_v15 = vmul.f32 %v690_v27, %v674_v55 }
 0x15f   : > { %v711_v53 = vmul.f32 %v690_v27, %v675_v60  ;;  %v712_v54 = vmul.f32 %v690_v27, %v676_v2  ;;  %v713_v56 = vmul.f32 %v690_v27, %v677_v6  ;;  %v714_v59 = vmul.f32 %v690_v27, %v678_v20 }
 0x160   : > { %v715_v63 = vmul.f32 %v690_v27, %v679_v31  ;;  %v716_v0 = vmul.f32 %v690_v27, %v680_v40  ;;  %v717_v4 = vmul.f32 %v690_v27, %v681_v49  ;;  %v718_v5 = vmul.f32 %v690_v27, %v682_v58  ;;  %v1230_v58 = vld [vmem:[%s2162_s3] ss:$0 sm:$0xff] }
 0x161   : > { %v719_v7 = vmul.f32 %v690_v27, %v683_v3  ;;  %v720_v10 = vmul.f32 %v690_v27, %v684_v14  ;;  %v721_v11 = vmul.f32 %v690_v27, %v685_v24  ;;  %v722_v17 = vmul.f32 %v690_v27, %v686_v36 }
 0x162   : > { %v730_v18 = vmul.f32 %v1229_v62, %v691_v46  ;;  %v731_v19 = vmul.f32 %v1229_v62, %v692_v29  ;;  %v732_v12 = vmul.f32 %v1229_v62, %v693_v32  ;;  %v733_v22 = vmul.f32 %v1229_v62, %v694_v57 }
 0x163   : > { %v734_v13 = vmul.f32 %v1229_v62, %v695_v8  ;;  %v735_v16 = vmul.f32 %v1229_v62, %v696_v33  ;;  %v736_v21 = vmul.f32 %v1229_v62, %v697_v1  ;;  %v737_v25 = vmul.f32 %v1229_v62, %v698_v34 }
 0x164   : > { %v738_v28 = vmul.f32 %v1229_v62, %v699_v37  ;;  %v739_v30 = vmul.f32 %v1229_v62, %v700_v38  ;;  %v740_v35 = vmul.f32 %v1229_v62, %v701_v23  ;;  %v741_v39 = vmul.f32 %v1229_v62, %v702_v41 }
 0x165   : > { %v742_v43 = vmul.f32 %v1229_v62, %v703_v44  ;;  %v743_v47 = vmul.f32 %v1229_v62, %v704_v42  ;;  %v744_v51 = vmul.f32 %v1229_v62, %v705_v45  ;;  %v745_v55 = vmul.f32 %v1229_v62, %v706_v48 }
 0x166   : > { %v746_v60 = vmul.f32 %v1229_v62, %v707_v61  ;;  %v747_v26 = vmul.f32 %v1229_v62, %v708_v50  ;;  %v748_v2 = vmul.f32 %v1229_v62, %v709_v52  ;;  %v749_v6 = vmul.f32 %v1229_v62, %v710_v15 }
 0x167   : > { %v750_v20 = vmul.f32 %v1229_v62, %v711_v53  ;;  %v751_v31 = vmul.f32 %v1229_v62, %v712_v54  ;;  %v752_v40 = vmul.f32 %v1229_v62, %v713_v56  ;;  %v753_v49 = vmul.f32 %v1229_v62, %v714_v59 }
 0x168   : > { %v754_v27 = vmul.f32 %v1229_v62, %v715_v63  ;;  %v755_v3 = vmul.f32 %v1229_v62, %v716_v0  ;;  %v756_v14 = vmul.f32 %v1229_v62, %v717_v4  ;;  %v757_v24 = vmul.f32 %v1229_v62, %v718_v5 }
 0x169   : > { %v758_v36 = vmul.f32 %v1229_v62, %v719_v7  ;;  %v759_v46 = vmul.f32 %v1229_v62, %v720_v10  ;;  %v760_v29 = vmul.f32 %v1229_v62, %v721_v11  ;;  %v761_v32 = vmul.f32 %v1229_v62, %v722_v17 }
 0x16a   : > { %v769_v57 = vadd.f32 %v1230_v58, %v730_v18  ;;  %v770_v8 = vadd.f32 %v1230_v58, %v731_v19  ;;  %v771_v33 = vadd.f32 %v1230_v58, %v732_v12  ;;  %v772_v1 = vadd.f32 %v1230_v58, %v733_v22 }
 0x16b   : > { %v773_v34 = vadd.f32 %v1230_v58, %v734_v13  ;;  %v774_v37 = vadd.f32 %v1230_v58, %v735_v16  ;;  %v775_v38 = vadd.f32 %v1230_v58, %v736_v21  ;;  %v776_v23 = vadd.f32 %v1230_v58, %v737_v25 }
 0x16c   : > { %v777_v41 = vadd.f32 %v1230_v58, %v738_v28  ;;  %v778_v44 = vadd.f32 %v1230_v58, %v739_v30  ;;  %v779_v42 = vadd.f32 %v1230_v58, %v740_v35  ;;  %v780_v45 = vadd.f32 %v1230_v58, %v741_v39 }
 0x16d   : > { %v781_v48 = vadd.f32 %v1230_v58, %v742_v43  ;;  %v782_v61 = vadd.f32 %v1230_v58, %v743_v47  ;;  %v783_v50 = vadd.f32 %v1230_v58, %v744_v51  ;;  %v784_v52 = vadd.f32 %v1230_v58, %v745_v55 }
 0x16e   : > { %v785_v15 = vadd.f32 %v1230_v58, %v746_v60  ;;  %v786_v53 = vadd.f32 %v1230_v58, %v747_v26  ;;  %v787_v54 = vadd.f32 %v1230_v58, %v748_v2  ;;  %v788_v56 = vadd.f32 %v1230_v58, %v749_v6 }
 0x16f   : > { %v789_v59 = vadd.f32 %v1230_v58, %v750_v20  ;;  %v790_v62 = vadd.f32 %v1230_v58, %v751_v31  ;;  %v791_v63 = vadd.f32 %v1230_v58, %v752_v40  ;;  %v792_v0 = vadd.f32 %v1230_v58, %v753_v49 }
 0x170   : > { %v793_v4 = vadd.f32 %v1230_v58, %v754_v27  ;;  %v794_v5 = vadd.f32 %v1230_v58, %v755_v3  ;;  %v795_v7 = vadd.f32 %v1230_v58, %v756_v14  ;;  %v796_v10 = vadd.f32 %v1230_v58, %v757_v24  ;;  %v1231_v3 = vld [vmem:[%s315_s29] ss:$0 sm:$0xff] }
 0x171   : > { %v797_v11 = vadd.f32 %v1230_v58, %v758_v36  ;;  %v798_v17 = vadd.f32 %v1230_v58, %v759_v46  ;;  %v799_v18 = vadd.f32 %v1230_v58, %v760_v29  ;;  %v800_v19 = vadd.f32 %v1230_v58, %v761_v32 }
 0x172   : > { %v809_v12 = vmul.f32 %v1815_v9, %v769_v57  ;;  %v810_v22 = vmul.f32 %v1815_v9, %v770_v8  ;;  %v811_v13 = vmul.f32 %v1815_v9, %v771_v33  ;;  %v812_v16 = vmul.f32 %v1815_v9, %v772_v1 }
 0x173   : > { %v813_v21 = vmul.f32 %v1815_v9, %v773_v34  ;;  %v814_v25 = vmul.f32 %v1815_v9, %v774_v37  ;;  %v815_v28 = vmul.f32 %v1815_v9, %v775_v38  ;;  %v816_v30 = vmul.f32 %v1815_v9, %v776_v23 }
 0x174   : > { %v817_v35 = vmul.f32 %v1815_v9, %v777_v41  ;;  %v818_v39 = vmul.f32 %v1815_v9, %v778_v44  ;;  %v819_v43 = vmul.f32 %v1815_v9, %v779_v42  ;;  %v820_v47 = vmul.f32 %v1815_v9, %v780_v45 }
 0x175   : > { %v821_v51 = vmul.f32 %v1815_v9, %v781_v48  ;;  %v822_v55 = vmul.f32 %v1815_v9, %v782_v61  ;;  %v823_v60 = vmul.f32 %v1815_v9, %v783_v50  ;;  %v824_v26 = vmul.f32 %v1815_v9, %v784_v52 }
 0x176   : > { %v825_v2 = vmul.f32 %v1815_v9, %v785_v15  ;;  %v826_v6 = vmul.f32 %v1815_v9, %v786_v53  ;;  %v827_v20 = vmul.f32 %v1815_v9, %v787_v54  ;;  %v828_v31 = vmul.f32 %v1815_v9, %v788_v56 }
 0x177   : > { %v829_v40 = vmul.f32 %v1815_v9, %v789_v59  ;;  %v830_v49 = vmul.f32 %v1815_v9, %v790_v62  ;;  %v831_v58 = vmul.f32 %v1815_v9, %v791_v63  ;;  %v832_v27 = vmul.f32 %v1815_v9, %v792_v0 }
 0x178   : > { %v833_v14 = vmul.f32 %v1815_v9, %v793_v4  ;;  %v834_v24 = vmul.f32 %v1815_v9, %v794_v5  ;;  %v835_v36 = vmul.f32 %v1815_v9, %v795_v7  ;;  %v836_v46 = vmul.f32 %v1815_v9, %v796_v10 }
 0x179   : > { %v837_v29 = vmul.f32 %v1815_v9, %v797_v11  ;;  %v838_v32 = vmul.f32 %v1815_v9, %v798_v17  ;;  %v839_v57 = vmul.f32 %v1815_v9, %v799_v18  ;;  %v840_v8 = vmul.f32 %v1815_v9, %v800_v19 }
 0x17a   : > { %v1921_v33 = vadd.f32 %v1231_v3, %v809_v12  ;;  %v1923_v1 = vadd.f32 %v1231_v3, %v810_v22  ;;  %v1925_v34 = vadd.f32 %v1231_v3, %v811_v13  ;;  %v1927_v37 = vadd.f32 %v1231_v3, %v812_v16 }
 0x17b   : > { %v1929_v38 = vadd.f32 %v1231_v3, %v813_v21  ;;  %v1931_v23 = vadd.f32 %v1231_v3, %v814_v25  ;;  %v1933_v41 = vadd.f32 %v1231_v3, %v815_v28  ;;  %v1935_v44 = vadd.f32 %v1231_v3, %v816_v30 }
 0x17c   : > { %v1937_v42 = vadd.f32 %v1231_v3, %v817_v35  ;;  %v1939_v45 = vadd.f32 %v1231_v3, %v818_v39  ;;  %v1941_v9 = vadd.f32 %v1231_v3, %v819_v43  ;;  %v1943_v48 = vadd.f32 %v1231_v3, %v820_v47 }
 0x17d   : > { %v1945_v61 = vadd.f32 %v1231_v3, %v821_v51  ;;  %v1947_v50 = vadd.f32 %v1231_v3, %v822_v55  ;;  %v1949_v52 = vadd.f32 %v1231_v3, %v823_v60  ;;  %v1951_v15 = vadd.f32 %v1231_v3, %v824_v26 }
 0x17e   : > { %v1953_v53 = vadd.f32 %v1231_v3, %v825_v2  ;;  %v1955_v54 = vadd.f32 %v1231_v3, %v826_v6  ;;  %v1957_v56 = vadd.f32 %v1231_v3, %v827_v20  ;;  %v1959_v59 = vadd.f32 %v1231_v3, %v828_v31 }
 0x17f   : > { %v1961_v62 = vadd.f32 %v1231_v3, %v829_v40  ;;  %v1963_v63 = vadd.f32 %v1231_v3, %v830_v49  ;;  %v1965_v0 = vadd.f32 %v1231_v3, %v831_v58  ;;  %v1967_v4 = vadd.f32 %v1231_v3, %v832_v27 }
 0x180   : > { %v1969_v5 = vadd.f32 %v1231_v3, %v833_v14  ;;  %v1971_v7 = vadd.f32 %v1231_v3, %v834_v24  ;;  %v1973_v10 = vadd.f32 %v1231_v3, %v835_v36  ;;  %v1975_v11 = vadd.f32 %v1231_v3, %v836_v46 }
 0x181   : > { %v1977_v17 = vadd.f32 %v1231_v3, %v837_v29  ;;  %v1979_v18 = vadd.f32 %v1231_v3, %v838_v32  ;;  %v1981_v19 = vadd.f32 %v1231_v3, %v839_v57  ;;  %v1983_v12 = vadd.f32 %v1231_v3, %v840_v8 }
 0x182   : > { %v1232_v22 = vmul.f32 -1.442695, %v1921_v33  ;;  %v1233_v13 = vmul.f32 -1.442695, %v1923_v1  ;;  %v1234_v16 = vmul.f32 -1.442695, %v1925_v34 }
 0x183   : > { %2169 = vst [vmem:[#allocation2_spill] sm:$0xff] %v1981_v19  ;;  %2170 = vst [vmem:[#allocation3_spill] sm:$0xff] %v1983_v12  ;;  %v1235_v21 = vmul.f32 -1.442695, %v1927_v37  ;;  %v1236_v25 = vmul.f32 -1.442695, %v1929_v38 }
 0x184   : > { %1303 = vpow2.f32 %v1232_v22  ;;  %v1237_v28 = vmul.f32 -1.442695, %v1931_v23  ;;  %v1238_v30 = vmul.f32 -1.442695, %v1933_v41  ;;  %v1239_v35 = vmul.f32 -1.442695, %v1935_v44 }
 0x185   : > { %1305 = vpow2.f32 %v1233_v13  ;;  %v1240_v39 = vmul.f32 -1.442695, %v1937_v42  ;;  %v1241_v43 = vmul.f32 -1.442695, %v1939_v45  ;;  %v1242_v47 = vmul.f32 -1.442695, %v1941_v9 }
 0x186   : > { %1307 = vpow2.f32 %v1234_v16  ;;  %v1243_v51 = vmul.f32 -1.442695, %v1943_v48  ;;  %v1244_v55 = vmul.f32 -1.442695, %v1945_v61  ;;  %v1245_v60 = vmul.f32 -1.442695, %v1947_v50 }
 0x187   : > { %1309 = vpow2.f32 %v1235_v21  ;;  %v1246_v2 = vmul.f32 -1.442695, %v1949_v52  ;;  %v1247_v20 = vmul.f32 -1.442695, %v1951_v15  ;;  %v1248_v40 = vmul.f32 -1.442695, %v1953_v53 }
 0x188   : > { %1311 = vpow2.f32 %v1236_v25  ;;  %v1249_v58 = vmul.f32 -1.442695, %v1955_v54  ;;  %v1250_v3 = vmul.f32 -1.442695, %v1957_v56  ;;  %v1251_v24 = vmul.f32 -1.442695, %v1959_v59 }
 0x189   : > { %1313 = vpow2.f32 %v1237_v28  ;;  %v1252_v46 = vmul.f32 -1.442695, %v1961_v62  ;;  %v1253_v32 = vmul.f32 -1.442695, %v1963_v63  ;;  %v1254_v8 = vmul.f32 -1.442695, %v1965_v0 }
 0x18a   : > { %1315 = vpow2.f32 %v1238_v30  ;;  %v1255_v13 = vmul.f32 -1.442695, %v1967_v4  ;;  %v1256_v21 = vmul.f32 -1.442695, %v1969_v5  ;;  %v1257_v28 = vmul.f32 -1.442695, %v1971_v7 }
 0x18b   : > { %1317 = vpow2.f32 %v1239_v35  ;;  %v1258_v35 = vmul.f32 -1.442695, %v1973_v10 }
 0x18c   : > { %1319 = vpow2.f32 %v1240_v39 }
 0x18d   : > { %1321 = vpow2.f32 %v1241_v43  ;;  %v1259_v43 = vmul.f32 -1.442695, %v1975_v11 }
 0x18e   : > { %v1304_v26 = vpop.eup %1303  ;;  %1323 = vpow2.f32 %v1242_v47 }
 0x18f   : > { %v1306_v6 = vpop.eup %1305  ;;  %1325 = vpow2.f32 %v1243_v51  ;;  %v1260_v51 = vmul.f32 -1.442695, %v1977_v17 }
 0x190   : > { %v1308_v31 = vpop.eup %1307  ;;  %1327 = vpow2.f32 %v1244_v55 }
 0x191   : > { %v1310_v49 = vpop.eup %1309  ;;  %1329 = vpow2.f32 %v1245_v60  ;;  %v1261_v60 = vmul.f32 -1.442695, %v1979_v18 }
 0x192   : > { %v1312_v27 = vpop.eup %1311  ;;  %1331 = vpow2.f32 %v1246_v2 }
 0x193   : > { %v1314_v14 = vpop.eup %1313  ;;  %1333 = vpow2.f32 %v1247_v20  ;;  %v1262_v20 = vmul.f32 -1.442695, %v1981_v19  ;;  %v980_v19 = vadd.f32 1.0, %v1312_v27 }
 0x194   : > { %v1316_v36 = vpop.eup %1315  ;;  %1335 = vpow2.f32 %v1248_v40 }
 0x195   : > { %v1318_v29 = vpop.eup %1317  ;;  %1337 = vpow2.f32 %v1249_v58  ;;  %v1263_v58 = vmul.f32 -1.442695, %v1983_v12  ;;  %v981_v12 = vadd.f32 1.0, %v1314_v14 }
 0x196   : > { %v1320_v57 = vpop.eup %1319  ;;  %1339 = vpow2.f32 %v1250_v3 }
 0x197   : > { %v1322_v22 = vpop.eup %1321  ;;  %1341 = vpow2.f32 %v1251_v24  ;;  %v976_v24 = vadd.f32 1.0, %v1304_v26 }
 0x198   : > { %v1324_v16 = vpop.eup %1323  ;;  %1343 = vpow2.f32 %v1252_v46  ;;  %v985_v27 = vadd.f32 1.0, %v1322_v22 }
 0x199   : > { %v1326_v25 = vpop.eup %1325  ;;  %1345 = vpow2.f32 %v1253_v32  ;;  %v977_v32 = vadd.f32 1.0, %v1306_v6  ;;  %v986_v14 = vadd.f32 1.0, %v1324_v16 }
 0x19a   : > { %v1328_v30 = vpop.eup %1327  ;;  %1347 = vpow2.f32 %v1254_v8 }
 0x19b   : > { %v1330_v39 = vpop.eup %1329  ;;  %1349 = vpow2.f32 %v1255_v13  ;;  %v978_v13 = vadd.f32 1.0, %v1308_v31 }
 0x19c   : > { %v1332_v47 = vpop.eup %1331  ;;  %1351 = vpow2.f32 %v1256_v21 }
 0x19d   : > { %v1334_v55 = vpop.eup %1333  ;;  %1353 = vpow2.f32 %v1257_v28  ;;  %v979_v28 = vadd.f32 1.0, %v1310_v49 }
 0x19e   : > { %v1336_v2 = vpop.eup %1335  ;;  %1355 = vpow2.f32 %v1258_v35  ;;  %v991_v16 = vadd.f32 1.0, %v1334_v55 }
 0x19f   : > { %v1338_v40 = vpop.eup %1337  ;;  %1357 = vpow2.f32 %v1259_v43 }
 0x1a0   : > { %v1340_v3 = vpop.eup %1339  ;;  %1359 = vpow2.f32 %v1260_v51  ;;  %v982_v51 = vadd.f32 1.0, %v1316_v36  ;;  %v987_v36 = vadd.f32 1.0, %v1326_v25 }
 0x1a1   : > { %v1342_v46 = vpop.eup %1341  ;;  %1361 = vpow2.f32 %v1261_v60  ;;  %v983_v60 = vadd.f32 1.0, %v1318_v29  ;;  %v988_v29 = vadd.f32 1.0, %v1328_v30  ;;  %v994_v55 = vadd.f32 1.0, %v1340_v3 }
 0x1a2   : > { %v2017_v8 = vpop.eup %1343  ;;  %1363 = vpow2.f32 %v1262_v20  ;;  %v984_v20 = vadd.f32 1.0, %v1320_v57 }
 0x1a3   : > { %v2019_v21 = vpop.eup %1345  ;;  %1365 = vpow2.f32 %v1263_v58 }
 0x1a4   : > { %v2021_v35 = vpop.eup %1347  ;;  %1367 = vrcp.f32 %v976_v24 }
 0x1a5   : > { %v2023_v43 = vpop.eup %1349  ;;  %1369 = vrcp.f32 %v977_v32 }
 0x1a6   : > { %v2025_v26 = vpop.eup %1351  ;;  %1371 = vrcp.f32 %v978_v13 }
 0x1a7   : > { %v2027_v6 = vpop.eup %1353  ;;  %1373 = vrcp.f32 %v979_v28  ;;  %v992_v28 = vadd.f32 1.0, %v1336_v2  ;;  %v995_v2 = vadd.f32 1.0, %v1342_v46 }
 0x1a8   : > { %v2029_v31 = vpop.eup %1355  ;;  %1375 = vrcp.f32 %v980_v19  ;;  %v989_v19 = vadd.f32 1.0, %v1330_v39 }
 0x1a9   : > { %v2031_v49 = vpop.eup %1357  ;;  %1377 = vrcp.f32 %v981_v12  ;;  %v990_v12 = vadd.f32 1.0, %v1332_v47 }
 0x1aa   : > { %v2033_v58 = vpop.eup %1359  ;;  %1379 = vrcp.f32 %v982_v51 }
 0x1ab   : > { %v2035_v24 = vpop.eup %1361  ;;  %1381 = vrcp.f32 %v983_v60  ;;  %v993_v60 = vadd.f32 1.0, %v1338_v40  ;;  %v996_v40 = vadd.f32 1.0, %v2017_v8 }
 0x1ac   : > { %v2037_v32 = vpop.eup %1363  ;;  %1383 = vrcp.f32 %v984_v20 }
 0x1ad   : > { %v2039_v13 = vpop.eup %1365  ;;  %1385 = vrcp.f32 %v985_v27 }
 0x1ae   : > { %v1368_v57 = vpop.eup %1367  ;;  %1387 = vrcp.f32 %v986_v14  ;;  %v997_v14 = vadd.f32 1.0, %v2019_v21 }
 0x1af   : > { %v1370_v22 = vpop.eup %1369  ;;  %1389 = vrcp.f32 %v987_v36  ;;  %v1072_v25 = vmul.f32 %v1368_v57, %v1921_v33  ;;  %v998_v36 = vadd.f32 1.0, %v2021_v35  ;;  %v1001_v57 = vadd.f32 1.0, %v2027_v6 }
 0x1b0   : > { %v1372_v30 = vpop.eup %1371  ;;  %1391 = vrcp.f32 %v988_v29  ;;  %v1073_v39 = vmul.f32 %v1370_v22, %v1923_v1  ;;  %v999_v29 = vadd.f32 1.0, %v2023_v43  ;;  %v1003_v22 = vadd.f32 1.0, %v2031_v49 }
 0x1b1   : > { %v1374_v51 = vpop.eup %1373  ;;  %1393 = vrcp.f32 %v989_v19  ;;  %v1074_v20 = vmul.f32 %v1372_v30, %v1925_v34  ;;  %1104 = vst.msk [vmem:[%s2046_s9] sm:$0xff] %vm392_vm1, %v1072_v25  ;;  %v1000_v19 = vadd.f32 1.0, %v2025_v26  ;;  %v1005_v25 = vadd.f32 1.0, %v2035_v24 }
 0x1b2   : > { %v1376_v47 = vpop.eup %1375  ;;  %1395 = vrcp.f32 %v990_v12  ;;  %v1075_v27 = vmul.f32 %v1374_v51, %v1927_v37  ;;  %1105 = vst.msk [vmem:[%s2046_s9 + $0x8] sm:$0xff] %vm392_vm1, %v1073_v39  ;;  %v1002_v12 = vadd.f32 1.0, %v2029_v31  ;;  %v1006_v30 = vadd.f32 1.0, %v2037_v32 }
 0x1b3   : > { %v1378_v33 = vpop.eup %1377  ;;  %1397 = vrcp.f32 %v991_v16  ;;  %v1076_v1 = vmul.f32 %v1376_v47, %v1929_v38  ;;  %1106 = vst.msk [vmem:[%s2046_s9 + $0x10] sm:$0xff] %vm392_vm1, %v1074_v20  ;;  %v1004_v16 = vadd.f32 1.0, %v2033_v58 }
 0x1b4   : > { %v1380_v34 = vpop.eup %1379  ;;  %1399 = vrcp.f32 %v992_v28  ;;  %v1077_v3 = vmul.f32 %v1378_v33, %v1931_v23  ;;  %1107 = vst.msk [vmem:[%s2046_s9 + $0x18] sm:$0xff] %vm392_vm1, %v1075_v27  ;;  %v1007_v28 = vadd.f32 1.0, %v2039_v13 }
 0x1b5   : > { %v1382_v37 = vpop.eup %1381  ;;  %1401 = vrcp.f32 %v993_v60  ;;  %v1078_v46 = vmul.f32 %v1380_v34, %v1933_v41  ;;  %1108 = vst.msk [vmem:[%s2046_s9 + $0x20] sm:$0xff] %vm392_vm1, %v1076_v1 }
 0x1b6   : > { %v1384_v38 = vpop.eup %1383  ;;  %1403 = vrcp.f32 %v994_v55  ;;  %v1079_v8 = vmul.f32 %v1382_v37, %v1935_v44  ;;  %1109 = vst.msk [vmem:[%s2046_s9 + $0x28] sm:$0xff] %vm392_vm1, %v1077_v3  ;;  %v2171_v3 = vld [vmem:[#allocation2_spill] sm:$0xff] }
 0x1b7   : > { %v1386_v23 = vpop.eup %1385  ;;  %1405 = vrcp.f32 %v995_v2  ;;  %v1080_v21 = vmul.f32 %v1384_v38, %v1937_v42  ;;  %1110 = vst.msk [vmem:[%s2046_s9 + $0x30] sm:$0xff] %vm392_vm1, %v1078_v46 }
 0x1b8   : > { %v1388_v41 = vpop.eup %1387  ;;  %1407 = vrcp.f32 %v996_v40  ;;  %v1081_v35 = vmul.f32 %v1386_v23, %v1939_v45  ;;  %1111 = vst.msk [vmem:[%s2046_s9 + $0x38] sm:$0xff] %vm392_vm1, %v1079_v8 }
 0x1b9   : > { %v1390_v44 = vpop.eup %1389  ;;  %1409 = vrcp.f32 %v997_v14  ;;  %v1082_v43 = vmul.f32 %v1388_v41, %v1941_v9  ;;  %1112 = vst.msk [vmem:[%s2046_s9 + $0x40] sm:$0xff] %vm392_vm1, %v1080_v21  ;;  %v2172_v14 = vld [vmem:[#allocation3_spill] sm:$0xff] }
 0x1ba   : > { %v1392_v42 = vpop.eup %1391  ;;  %1411 = vrcp.f32 %v998_v36  ;;  %v1083_v26 = vmul.f32 %v1390_v44, %v1943_v48  ;;  %1113 = vst.msk [vmem:[%s2046_s9 + $0x48] sm:$0xff] %vm392_vm1, %v1081_v35 }
 0x1bb   : > { %v1394_v45 = vpop.eup %1393  ;;  %1413 = vrcp.f32 %v999_v29  ;;  %v1084_v6 = vmul.f32 %v1392_v42, %v1945_v61  ;;  %1114 = vst.msk [vmem:[%s2046_s9 + $0x50] sm:$0xff] %vm392_vm1, %v1082_v43 }
 0x1bc   : > { %v1396_v9 = vpop.eup %1395  ;;  %1415 = vrcp.f32 %v1000_v19  ;;  %v1085_v31 = vmul.f32 %v1394_v45, %v1947_v50  ;;  %1115 = vst.msk [vmem:[%s2046_s9 + $0x58] sm:$0xff] %vm392_vm1, %v1083_v26 }
 0x1bd   : > { %v1398_v48 = vpop.eup %1397  ;;  %1417 = vrcp.f32 %v1001_v57  ;;  %v1086_v49 = vmul.f32 %v1396_v9, %v1949_v52  ;;  %1116 = vst.msk [vmem:[%s2046_s9 + $0x60] sm:$0xff] %vm392_vm1, %v1084_v6 }
 0x1be   : > { %v1400_v61 = vpop.eup %1399  ;;  %1419 = vrcp.f32 %v1002_v12  ;;  %v1087_v58 = vmul.f32 %v1398_v48, %v1951_v15  ;;  %1117 = vst.msk [vmem:[%s2046_s9 + $0x68] sm:$0xff] %vm392_vm1, %v1085_v31 }
 0x1bf   : > { %v1402_v50 = vpop.eup %1401  ;;  %1421 = vrcp.f32 %v1003_v22  ;;  %v1088_v24 = vmul.f32 %v1400_v61, %v1953_v53  ;;  %1118 = vst.msk [vmem:[%s2046_s9 + $0x70] sm:$0xff] %vm392_vm1, %v1086_v49 }
 0x1c0   : > { %v1404_v52 = vpop.eup %1403  ;;  %1423 = vrcp.f32 %v1004_v16  ;;  %v1089_v32 = vmul.f32 %v1402_v50, %v1955_v54  ;;  %1119 = vst.msk [vmem:[%s2046_s9 + $0x78] sm:$0xff] %vm392_vm1, %v1087_v58 }
 0x1c1   : > { %v1406_v15 = vpop.eup %1405  ;;  %1425 = vrcp.f32 %v1005_v25  ;;  %v1090_v39 = vmul.f32 %v1404_v52, %v1957_v56  ;;  %1120 = vst.msk [vmem:[%s2046_s9 + $0x80] sm:$0xff] %vm392_vm1, %v1088_v24 }
 0x1c2   : > { %v1408_v13 = vpop.eup %1407  ;;  %1427 = vrcp.f32 %v1006_v30  ;;  %v1091_v53 = vmul.f32 %v1406_v15, %v1959_v59  ;;  %1121 = vst.msk [vmem:[%s2046_s9 + $0x88] sm:$0xff] %vm392_vm1, %v1089_v32 }
 0x1c3   : > { %v1410_v51 = vpop.eup %1409  ;;  %1429 = vrcp.f32 %v1007_v28  ;;  %v1092_v54 = vmul.f32 %v1408_v13, %v1961_v62  ;;  %1122 = vst.msk [vmem:[%s2046_s9 + $0x90] sm:$0xff] %vm392_vm1, %v1090_v39 }
 0x1c4   : > { %v1412_v60 = vpop.eup %1411  ;;  %v1093_v56 = vmul.f32 %v1410_v51, %v1963_v63  ;;  %1123 = vst.msk [vmem:[%s2046_s9 + $0x98] sm:$0xff] %vm392_vm1, %v1091_v53 }
 0x1c5   : > { %v1414_v20 = vpop.eup %1413  ;;  %v1094_v47 = vmul.f32 %v1412_v60, %v1965_v0  ;;  %1124 = vst.msk [vmem:[%s2046_s9 + $0xa0] sm:$0xff] %vm392_vm1, %v1092_v54 }
 0x1c6   : > { %v1416_v59 = vpop.eup %1415  ;;  %v1095_v55 = vmul.f32 %v1414_v20, %v1967_v4  ;;  %1125 = vst.msk [vmem:[%s2046_s9 + $0xa8] sm:$0xff] %vm392_vm1, %v1093_v56 }
 0x1c7   : > { %v1418_v62 = vpop.eup %1417  ;;  %v1096_v27 = vmul.f32 %v1416_v59, %v1969_v5  ;;  %1126 = vst.msk [vmem:[%s2046_s9 + $0xb0] sm:$0xff] %vm392_vm1, %v1094_v47 }
 0x1c8   : > { %v1420_v63 = vpop.eup %1419  ;;  %v1097_v33 = vmul.f32 %v1418_v62, %v1971_v7  ;;  %1127 = vst.msk [vmem:[%s2046_s9 + $0xb8] sm:$0xff] %vm392_vm1, %v1095_v55 }
 0x1c9   : > { %v1422_v0 = vpop.eup %1421  ;;  %v1098_v2 = vmul.f32 %v1420_v63, %v1973_v10  ;;  %1128 = vst.msk [vmem:[%s2046_s9 + $0xc0] sm:$0xff] %vm392_vm1, %v1096_v27 }
 0x1ca   : > { %v1424_v4 = vpop.eup %1423  ;;  %v1099_v5 = vmul.f32 %v1422_v0, %v1975_v11  ;;  %1129 = vst.msk [vmem:[%s2046_s9 + $0xc8] sm:$0xff] %vm392_vm1, %v1097_v33 }
 0x1cb   : > { %v1426_v1 = vpop.eup %1425  ;;  %v1100_v34 = vmul.f32 %v1424_v4, %v1977_v17  ;;  %1130 = vst.msk [vmem:[%s2046_s9 + $0xd0] sm:$0xff] %vm392_vm1, %v1098_v2 }
 0x1cc   : > { %v1428_v7 = vpop.eup %1427  ;;  %v1101_v40 = vmul.f32 %v1426_v1, %v1979_v18  ;;  %1131 = vst.msk [vmem:[%s2046_s9 + $0xd8] sm:$0xff] %vm392_vm1, %v1099_v5 }
 0x1cd   : > { %v1430_v10 = vpop.eup %1429  ;;  %v1102_v37 = vmul.f32 %v1428_v7, %v2171_v3  ;;  %1132 = vst.msk [vmem:[%s2046_s9 + $0xe0] sm:$0xff] %vm392_vm1, %v1100_v34 }
 0x1ce   : > { %v1103_v46 = vmul.f32 %v1430_v10, %v2172_v14  ;;  %1133 = vst.msk [vmem:[%s2046_s9 + $0xe8] sm:$0xff] %vm392_vm1, %v1101_v40 }
 0x1cf   : > { %1134 = vst.msk [vmem:[%s2046_s9 + $0xf0] sm:$0xff] %vm392_vm1, %v1102_v37 }
 0x1d0   : > { %1135 = vst.msk [vmem:[%s2046_s9 + $0xf8] sm:$0xff] %vm392_vm1, %v1103_v46 }
 0x1d1 PF: > { %s17_s24 = sadd.s32 1, %s1437_s24  }
 0x1d2   : > { %p14_p4 = scmp.ge.s32.totalorder %s17_s24, 4  }
 0x1d4   :  { %16 = sbr.rel (!%p14_p4) target bundleno = 1 (0x1), region = 87 }

</bundles_post_ra>
